<compile_context>
chip_gen: v7x
topology: tpu7x:2x2x1
jax: 0.10.0
libtpu: 0.0.40
codegen_flags: <defaults>
</compile_context>

<pallas_src>
import jax
import jax.numpy as jnp
from jax.experimental import pallas as pl
from jax.experimental.pallas import tpu as pltpu

HIDDEN_DIM = 100
H_PAD = 128            # lane-aligned hidden width
NEG_SLOPE = 1e-5


def _round_up(x, m):
    return (x + m - 1) // m * m


def _leaky_relu(x, slope=NEG_SLOPE):
    return jnp.where(x > 0, x, slope * x)


def turbine_mlp_kernel(
    x_ref,
    w1_ref, b1_ref,
    w2_ref, b2_ref,
    w3_ref, b3_ref,
    w4_ref, b4_ref,
    w5_ref, b5_ref,
    out_ref,
):
    # Hot path: 5 matmuls (MXU, f32 accumulation) + elementwise activations
    # (VPU) + one sigmoid (EUP), all fused on a single VMEM-resident batch tile.
    def linear(h, w_ref, b_ref):
        return (
            jnp.dot(h, w_ref[...], preferred_element_type=jnp.float32)
            + b_ref[...]
        )

    h = x_ref[...].astype(jnp.float32)                 # (TILE_B, F)
    h = _leaky_relu(linear(h, w1_ref, b1_ref))         # (TILE_B, 128)
    h = _leaky_relu(linear(h, w2_ref, b2_ref))
    h = _leaky_relu(linear(h, w3_ref, b3_ref))
    h = _leaky_relu(linear(h, w4_ref, b4_ref))
    logits = linear(h, w5_ref, b5_ref)                 # (TILE_B, 1)
    out_ref[...] = jax.nn.sigmoid(logits).astype(out_ref.dtype)


def _pad_params(params):
    """Zero-pad hidden dim 100 -> 128 (exact: zero rows/cols contribute 0)."""
    (w1, b1), (w2, b2), (w3, b3), (w4, b4), (w5, b5) = params

    def pad_cols(a, to):
        return jnp.pad(a, ((0, 0), (0, to - a.shape[1])))

    def pad_rows(a, to):
        return jnp.pad(a, ((0, to - a.shape[0]), (0, 0)))

    w1p, b1p = pad_cols(w1, H_PAD), pad_cols(b1, H_PAD)            # (F,128), (1,128)
    w2p, b2p = pad_cols(pad_rows(w2, H_PAD), H_PAD), pad_cols(b2, H_PAD)
    w3p, b3p = pad_cols(pad_rows(w3, H_PAD), H_PAD), pad_cols(b3, H_PAD)
    w4p, b4p = pad_cols(pad_rows(w4, H_PAD), H_PAD), pad_cols(b4, H_PAD)
    w5p, b5p = pad_rows(w5, H_PAD), b5                              # (128,1), (1,1)
    return [(w1p, b1p), (w2p, b2p), (w3p, b3p), (w4p, b4p), (w5p, b5p)]


def _default_tile_b(num_features):
    """Large batch tile (compute-bound => amortize grid-step overhead), but keep
    the double-buffered x tile under ~8 MiB so total VMEM stays comfortable."""
    budget = 8 * 1024 * 1024
    t = budget // (2 * max(num_features, 1) * 4)
    t = (t // 128) * 128
    return int(max(512, min(4096, t)))


def turbine_mlp_forward(x, params, *, tile_b=None):
    """x: (B, num_features) float32. Returns (B,) float32 (matches .view(-1))."""
    x = x.astype(jnp.float32)
    B, F = x.shape

    if tile_b is None:
        tile_b = _default_tile_b(F)

    # Pad hidden dim to 128 (wrapper-side XLA glue; fuses/consts under jit).
    padded = _pad_params(params)
    flat_params = []
    for (w, b) in padded:
        flat_params.append(w)
        flat_params.append(b)

    # Batch tiling: tile must be a multiple of 8; pad B up to a tile multiple.
    tile_b = min(tile_b, _round_up(max(B, 1), 8))
    b_pad = _round_up(B, tile_b)
    if b_pad != B:
        x = jnp.pad(x, ((0, b_pad - B), (0, 0)))
    num_tiles = pl.cdiv(b_pad, tile_b)

    x_spec = pl.BlockSpec((tile_b, F), lambda i: (i, 0))
    # Constant index_map => weights/biases DMA'd once, VMEM-resident across grid.
    param_specs = [
        pl.BlockSpec(a.shape, lambda i: (0, 0)) for a in flat_params
    ]
    out_spec = pl.BlockSpec((tile_b, 1), lambda i: (i, 0))

    out = pl.pallas_call(
        turbine_mlp_kernel,
        out_shape=jax.ShapeDtypeStruct((b_pad, 1), jnp.float32),
        grid=(num_tiles,),
        in_specs=[x_spec] + param_specs,
        out_specs=out_spec,
        compiler_params=pltpu.CompilerParams(
            dimension_semantics=("parallel",),      # v7x megacore sharding
            vmem_limit_bytes=32 * 1024 * 1024,      # headroom on all generations
        ),
    )(x, *flat_params)

    return out[:B, 0]


def _xavier_uniform(key, in_dim, out_dim):
    # Matches torch.nn.init.xavier_uniform_ for a Linear weight (out, in),
    # stored transposed here as (in, out).
    limit = jnp.sqrt(6.0 / (in_dim + out_dim))
    return jax.random.uniform(
        key, (in_dim, out_dim), minval=-limit, maxval=limit, dtype=jnp.float32
    )


def _default_bias(key, in_dim, out_dim):
    # PyTorch nn.Linear default bias init: U(-1/sqrt(fan_in), 1/sqrt(fan_in)).
    bound = 1.0 / jnp.sqrt(in_dim)
    return jax.random.uniform(
        key, (1, out_dim), minval=-bound, maxval=bound, dtype=jnp.float32
    )


def init_params(key, num_features, hidden_dim=HIDDEN_DIM):
    dims = [
        (num_features, hidden_dim),
        (hidden_dim, hidden_dim),
        (hidden_dim, hidden_dim),
        (hidden_dim, hidden_dim),
        (hidden_dim, 1),
    ]
    params = []
    for (din, dout) in dims:
        key, kw, kb = jax.random.split(key, 3)
        params.append((_xavier_uniform(kw, din, dout), _default_bias(kb, din, dout)))
    return params


def reference_forward(x, params):
    h = x
    for (w, b) in params[:-1]:
        h = h @ w + b
        h = jnp.where(h > 0, h, NEG_SLOPE * h)
    w, b = params[-1]
    return jax.nn.sigmoid((h @ w + b).reshape(-1))


if __name__ == "__main__":
    key = jax.random.PRNGKey(0)
    k_x, k_p = jax.random.split(key)

    batch = 8
    num_features = 16
    x = jax.random.normal(k_x, (batch, num_features), dtype=jnp.float32)
    params = init_params(k_p, num_features)

    out = turbine_mlp_forward(x, params)
    out = jax.block_until_ready(out)

    ref = reference_forward(x, params)
    assert out.shape == (batch,)
    assert jnp.allclose(out, ref, atol=1e-5, rtol=1e-5), (out, ref)

    print("KERNEL_OK")
</pallas_src>

<mosaic_0001>
module attributes {stable_mosaic.version = 11 : i64} {
  func.func @turbine_mlp_kernel(%arg0: i32, %arg1: memref<8x16xf32, #tpu.memory_space<vmem>>, %arg2: memref<16x128xf32, #tpu.memory_space<vmem>>, %arg3: memref<1x128xf32, #tpu.memory_space<vmem>>, %arg4: memref<128x128xf32, #tpu.memory_space<vmem>>, %arg5: memref<1x128xf32, #tpu.memory_space<vmem>>, %arg6: memref<128x128xf32, #tpu.memory_space<vmem>>, %arg7: memref<1x128xf32, #tpu.memory_space<vmem>>, %arg8: memref<128x128xf32, #tpu.memory_space<vmem>>, %arg9: memref<1x128xf32, #tpu.memory_space<vmem>>, %arg10: memref<128x1xf32, #tpu.memory_space<vmem>>, %arg11: memref<1x1xf32, #tpu.memory_space<vmem>>, %arg12: memref<8x1xf32, #tpu.memory_space<vmem>>) attributes {dimension_semantics = [#tpu.dimension_semantics<parallel>], iteration_bounds = array<i64: 1>, scalar_prefetch = 0 : i64, scratch_operands = 0 : i64, tpu.core_type = #tpu.core_type<tc>, window_params = [{transform_indices = @transform_0, window_bounds = array<i64: 8, 16>}, {pipeline_mode = #tpu.pipeline_mode<synchronous>, transform_indices = @transform_1, window_bounds = array<i64: 16, 128>}, {pipeline_mode = #tpu.pipeline_mode<synchronous>, transform_indices = @transform_2, window_bounds = array<i64: 1, 128>}, {pipeline_mode = #tpu.pipeline_mode<synchronous>, transform_indices = @transform_3, window_bounds = array<i64: 128, 128>}, {pipeline_mode = #tpu.pipeline_mode<synchronous>, transform_indices = @transform_4, window_bounds = array<i64: 1, 128>}, {pipeline_mode = #tpu.pipeline_mode<synchronous>, transform_indices = @transform_5, window_bounds = array<i64: 128, 128>}, {pipeline_mode = #tpu.pipeline_mode<synchronous>, transform_indices = @transform_6, window_bounds = array<i64: 1, 128>}, {pipeline_mode = #tpu.pipeline_mode<synchronous>, transform_indices = @transform_7, window_bounds = array<i64: 128, 128>}, {pipeline_mode = #tpu.pipeline_mode<synchronous>, transform_indices = @transform_8, window_bounds = array<i64: 1, 128>}, {pipeline_mode = #tpu.pipeline_mode<synchronous>, transform_indices = @transform_9, window_bounds = array<i64: 128, 1>}, {pipeline_mode = #tpu.pipeline_mode<synchronous>, transform_indices = @transform_10, window_bounds = array<i64: 1, 1>}, {transform_indices = @transform_11, window_bounds = array<i64: 8, 1>}]} {
    %c0 = arith.constant 0 : index
    %c0_0 = arith.constant 0 : index
    %0 = vector.load %arg1[%c0, %c0_0] : memref<8x16xf32, #tpu.memory_space<vmem>>, vector<8x16xf32>
    %c0_1 = arith.constant 0 : index
    %c0_2 = arith.constant 0 : index
    %1 = vector.load %arg2[%c0_1, %c0_2] : memref<16x128xf32, #tpu.memory_space<vmem>>, vector<16x128xf32>
    %cst = arith.constant dense<0.000000e+00> : vector<8x128xf32>
    %2 = tpu.matmul %0, %1, %cst {dimension_numbers = #tpu.dot_dimension_numbers<[1], [0], [0], [1], [0, 0, 1, 1], [], []>} : vector<8x16xf32>, vector<16x128xf32>, vector<8x128xf32> -> vector<8x128xf32>
    %c0_3 = arith.constant 0 : index
    %c0_4 = arith.constant 0 : index
    %3 = vector.load %arg3[%c0_3, %c0_4] : memref<1x128xf32, #tpu.memory_space<vmem>>, vector<1x128xf32>
    %4 = vector.broadcast %3 : vector<1x128xf32> to vector<8x128xf32>
    %5 = arith.addf %2, %4 : vector<8x128xf32>
    %cst_5 = arith.constant 0.000000e+00 : f32
    %6 = vector.broadcast %cst_5 : f32 to vector<8x128xf32>
    %7 = arith.cmpf ogt, %5, %6 : vector<8x128xf32>
    %cst_6 = arith.constant 9.99999974E-6 : f32
    %8 = vector.broadcast %cst_6 : f32 to vector<8x128xf32>
    %9 = arith.mulf %8, %5 : vector<8x128xf32>
    %10 = arith.select %7, %5, %9 : vector<8x128xi1>, vector<8x128xf32>
    %c0_7 = arith.constant 0 : index
    %c0_8 = arith.constant 0 : index
    %11 = vector.load %arg4[%c0_7, %c0_8] : memref<128x128xf32, #tpu.memory_space<vmem>>, vector<128x128xf32>
    %cst_9 = arith.constant dense<0.000000e+00> : vector<8x128xf32>
    %12 = tpu.matmul %10, %11, %cst_9 {dimension_numbers = #tpu.dot_dimension_numbers<[1], [0], [0], [1], [0, 0, 1, 1], [], []>} : vector<8x128xf32>, vector<128x128xf32>, vector<8x128xf32> -> vector<8x128xf32>
    %c0_10 = arith.constant 0 : index
    %c0_11 = arith.constant 0 : index
    %13 = vector.load %arg5[%c0_10, %c0_11] : memref<1x128xf32, #tpu.memory_space<vmem>>, vector<1x128xf32>
    %14 = vector.broadcast %13 : vector<1x128xf32> to vector<8x128xf32>
    %15 = arith.addf %12, %14 : vector<8x128xf32>
    %cst_12 = arith.constant 0.000000e+00 : f32
    %16 = vector.broadcast %cst_12 : f32 to vector<8x128xf32>
    %17 = arith.cmpf ogt, %15, %16 : vector<8x128xf32>
    %cst_13 = arith.constant 9.99999974E-6 : f32
    %18 = vector.broadcast %cst_13 : f32 to vector<8x128xf32>
    %19 = arith.mulf %18, %15 : vector<8x128xf32>
    %20 = arith.select %17, %15, %19 : vector<8x128xi1>, vector<8x128xf32>
    %c0_14 = arith.constant 0 : index
    %c0_15 = arith.constant 0 : index
    %21 = vector.load %arg6[%c0_14, %c0_15] : memref<128x128xf32, #tpu.memory_space<vmem>>, vector<128x128xf32>
    %cst_16 = arith.constant dense<0.000000e+00> : vector<8x128xf32>
    %22 = tpu.matmul %20, %21, %cst_16 {dimension_numbers = #tpu.dot_dimension_numbers<[1], [0], [0], [1], [0, 0, 1, 1], [], []>} : vector<8x128xf32>, vector<128x128xf32>, vector<8x128xf32> -> vector<8x128xf32>
    %c0_17 = arith.constant 0 : index
    %c0_18 = arith.constant 0 : index
    %23 = vector.load %arg7[%c0_17, %c0_18] : memref<1x128xf32, #tpu.memory_space<vmem>>, vector<1x128xf32>
    %24 = vector.broadcast %23 : vector<1x128xf32> to vector<8x128xf32>
    %25 = arith.addf %22, %24 : vector<8x128xf32>
    %cst_19 = arith.constant 0.000000e+00 : f32
    %26 = vector.broadcast %cst_19 : f32 to vector<8x128xf32>
    %27 = arith.cmpf ogt, %25, %26 : vector<8x128xf32>
    %cst_20 = arith.constant 9.99999974E-6 : f32
    %28 = vector.broadcast %cst_20 : f32 to vector<8x128xf32>
    %29 = arith.mulf %28, %25 : vector<8x128xf32>
    %30 = arith.select %27, %25, %29 : vector<8x128xi1>, vector<8x128xf32>
    %c0_21 = arith.constant 0 : index
    %c0_22 = arith.constant 0 : index
    %31 = vector.load %arg8[%c0_21, %c0_22] : memref<128x128xf32, #tpu.memory_space<vmem>>, vector<128x128xf32>
    %cst_23 = arith.constant dense<0.000000e+00> : vector<8x128xf32>
    %32 = tpu.matmul %30, %31, %cst_23 {dimension_numbers = #tpu.dot_dimension_numbers<[1], [0], [0], [1], [0, 0, 1, 1], [], []>} : vector<8x128xf32>, vector<128x128xf32>, vector<8x128xf32> -> vector<8x128xf32>
    %c0_24 = arith.constant 0 : index
    %c0_25 = arith.constant 0 : index
    %33 = vector.load %arg9[%c0_24, %c0_25] : memref<1x128xf32, #tpu.memory_space<vmem>>, vector<1x128xf32>
    %34 = vector.broadcast %33 : vector<1x128xf32> to vector<8x128xf32>
    %35 = arith.addf %32, %34 : vector<8x128xf32>
    %cst_26 = arith.constant 0.000000e+00 : f32
    %36 = vector.broadcast %cst_26 : f32 to vector<8x128xf32>
    %37 = arith.cmpf ogt, %35, %36 : vector<8x128xf32>
    %cst_27 = arith.constant 9.99999974E-6 : f32
    %38 = vector.broadcast %cst_27 : f32 to vector<8x128xf32>
    %39 = arith.mulf %38, %35 : vector<8x128xf32>
    %40 = arith.select %37, %35, %39 : vector<8x128xi1>, vector<8x128xf32>
    %c0_28 = arith.constant 0 : index
    %c0_29 = arith.constant 0 : index
    %41 = vector.load %arg10[%c0_28, %c0_29] : memref<128x1xf32, #tpu.memory_space<vmem>>, vector<128x1xf32>
    %cst_30 = arith.constant dense<0.000000e+00> : vector<8x1xf32>
    %42 = tpu.matmul %40, %41, %cst_30 {dimension_numbers = #tpu.dot_dimension_numbers<[1], [0], [0], [1], [0, 0, 1, 1], [], []>} : vector<8x128xf32>, vector<128x1xf32>, vector<8x1xf32> -> vector<8x1xf32>
    %c0_31 = arith.constant 0 : index
    %c0_32 = arith.constant 0 : index
    %43 = vector.load %arg11[%c0_31, %c0_32] : memref<1x1xf32, #tpu.memory_space<vmem>>, vector<1x1xf32>
    %44 = vector.broadcast %43 : vector<1x1xf32> to vector<8x1xf32>
    %45 = arith.addf %42, %44 : vector<8x1xf32>
    %46 = arith.negf %45 : vector<8x1xf32>
    %47 = math.exp %46 : vector<8x1xf32>
    %cst_33 = arith.constant 1.000000e+00 : f32
    %48 = vector.broadcast %cst_33 : f32 to vector<8x1xf32>
    %49 = arith.addf %48, %47 : vector<8x1xf32>
    %50 = arith.divf %48, %49 : vector<8x1xf32>
    %c0_34 = arith.constant 0 : index
    %c0_35 = arith.constant 0 : index
    %51 = vector.load %arg12[%c0_34, %c0_35] : memref<8x1xf32, #tpu.memory_space<vmem>>, vector<8x1xf32>
    tpu.vector_store %arg12[%c0_34, %c0_35], %50 {strides = array<i32>} : memref<8x1xf32, #tpu.memory_space<vmem>>, vector<8x1xf32>,
    return
  }
  func.func @transform_0(%arg0: i32) -> (i32, i32) {
    %c0_i32 = arith.constant 0 : i32
    %c0_i32_0 = arith.constant 0 : i32
    return %arg0, %c0_i32 : i32, i32
  }
  func.func @transform_1(%arg0: i32) -> (i32, i32) {
    %c0_i32 = arith.constant 0 : i32
    %c0_i32_0 = arith.constant 0 : i32
    %c0_i32_1 = arith.constant 0 : i32
    return %c0_i32, %c0_i32_0 : i32, i32
  }
  func.func @transform_2(%arg0: i32) -> (i32, i32) {
    %c0_i32 = arith.constant 0 : i32
    %c0_i32_0 = arith.constant 0 : i32
    %c0_i32_1 = arith.constant 0 : i32
    return %c0_i32, %c0_i32_0 : i32, i32
  }
  func.func @transform_3(%arg0: i32) -> (i32, i32) {
    %c0_i32 = arith.constant 0 : i32
    %c0_i32_0 = arith.constant 0 : i32
    %c0_i32_1 = arith.constant 0 : i32
    return %c0_i32, %c0_i32_0 : i32, i32
  }
  func.func @transform_4(%arg0: i32) -> (i32, i32) {
    %c0_i32 = arith.constant 0 : i32
    %c0_i32_0 = arith.constant 0 : i32
    %c0_i32_1 = arith.constant 0 : i32
    return %c0_i32, %c0_i32_0 : i32, i32
  }
  func.func @transform_5(%arg0: i32) -> (i32, i32) {
    %c0_i32 = arith.constant 0 : i32
    %c0_i32_0 = arith.constant 0 : i32
    %c0_i32_1 = arith.constant 0 : i32
    return %c0_i32, %c0_i32_0 : i32, i32
  }
  func.func @transform_6(%arg0: i32) -> (i32, i32) {
    %c0_i32 = arith.constant 0 : i32
    %c0_i32_0 = arith.constant 0 : i32
    %c0_i32_1 = arith.constant 0 : i32
    return %c0_i32, %c0_i32_0 : i32, i32
  }
  func.func @transform_7(%arg0: i32) -> (i32, i32) {
    %c0_i32 = arith.constant 0 : i32
    %c0_i32_0 = arith.constant 0 : i32
    %c0_i32_1 = arith.constant 0 : i32
    return %c0_i32, %c0_i32_0 : i32, i32
  }
  func.func @transform_8(%arg0: i32) -> (i32, i32) {
    %c0_i32 = arith.constant 0 : i32
    %c0_i32_0 = arith.constant 0 : i32
    %c0_i32_1 = arith.constant 0 : i32
    return %c0_i32, %c0_i32_0 : i32, i32
  }
  func.func @transform_9(%arg0: i32) -> (i32, i32) {
    %c0_i32 = arith.constant 0 : i32
    %c0_i32_0 = arith.constant 0 : i32
    %c0_i32_1 = arith.constant 0 : i32
    return %c0_i32, %c0_i32_0 : i32, i32
  }
  func.func @transform_10(%arg0: i32) -> (i32, i32) {
    %c0_i32 = arith.constant 0 : i32
    %c0_i32_0 = arith.constant 0 : i32
    %c0_i32_1 = arith.constant 0 : i32
    return %c0_i32, %c0_i32_0 : i32, i32
  }
  func.func @transform_11(%arg0: i32) -> (i32, i32) {
    %c0_i32 = arith.constant 0 : i32
    %c0_i32_0 = arith.constant 0 : i32
    return %arg0, %c0_i32 : i32, i32
  }
}

</mosaic_0001>

<bundles_post_ra>
// kernel: tpu_custom_call.1
= control target key start
LH: loop header
LB: loop body
LE: loop exit
PB: predicated region body
PF: predicated region fallthrough
CT: control target
= control target key end

     0   :  { %s1282_s0 = inlined_call_operand.hbm [shape: f32[8,16], index: 0, kind: input, shape index: {}]   ;;  %s1283_s1 = inlined_call_operand.vmem [shape: f32[16,128], index: 1, kind: input, shape index: {}]   ;;  %s1284_s2 = inlined_call_operand.hbm [shape: f32[1,128], index: 2, kind: input, shape index: {}]   ;;  %s1285_s3 = inlined_call_operand.vmem [shape: f32[128,128], index: 3, kind: input, shape index: {}]   ;;  %s1286_s4 = inlined_call_operand.vmem [shape: f32[1,128], index: 4, kind: input, shape index: {}]   ;;  %s1287_s5 = inlined_call_operand.hbm [shape: f32[128,128], index: 5, kind: input, shape index: {}]   ;;  %s1288_s6 = inlined_call_operand.vmem [shape: f32[1,128], index: 6, kind: input, shape index: {}]   ;;  %s1289_s7 = inlined_call_operand.hbm [shape: f32[128,128], index: 7, kind: input, shape index: {}]   ;;  %s1290_s8 = inlined_call_operand.vmem [shape: f32[1,128], index: 8, kind: input, shape index: {}]   ;;  %s1291_s9 = inlined_call_operand.vmem [shape: f32[128,1], index: 9, kind: input, shape index: {}]   ;;  %s1292_s10 = inlined_call_operand.<no memory space> [shape: f32[1,1], index: 10, kind: input, shape index: {}]   ;;  %s1293_s11 = inlined_call_operand.vmem [shape: f32[8,1], index: 11, kind: output, shape index: {}]  }
   0x1   :  { %v16_v0 = vstv %s1292_s10 }
   0x2   :  { %17 = vst [vmem:[#allocation2] sm:$0x1] %v16_v0 }
   0x3   :  { %18 = vsyncpa [#allocation4], 0 }
   0x4   :  { %19 = vsyncpa [#allocation6], 0 }
   0x5   :  { %20 = vsyncpa [#allocation9], 0  ;;  %s1005_s19 = smov [#allocation5]   ;;  %s1006_s21 = smov [#allocation3]  }
   0x6   :  { %s39_s20 = sshll.u32 %s1005_s19, 4  ;;  %s27_s22 = sshll.u32 %s1006_s21, 4  ;;  %s40_s20 = int_to_ptr.vmem [resolvable:$true] %s39_s20  ;;  %s28_s22 = int_to_ptr.vmem [resolvable:$true] %s27_s22 }
   0x7   :  { %s911_s25 = scalar_lea.hbm %s1284_s2, 16 }
   0x8   :  { %p912_p0 = scmp.ne.s32.totalorder %s1284_s2, %s911_s25  ;;  %p915_p1 = scmp.lt.u32.totalorder %s911_s25, %s1284_s2 }
   0xa   :  { %p917_p2 = pnand %p915_p1, %p912_p0 }
   0xc   :  { %920 = shalt.err (!%p917_p2)
}
   0xd   :  { %s921_s29 = scalar_lea.vmem %s40_s20, 16  ;;  %s925_s30 = scalar_lea.vmem %s40_s20, 32 }
   0xe   :  { %p922_p3 = scmp.ne.s32.totalorder %s40_s20, %s921_s29  ;;  %p926_p4 = scmp.lt.s32.totalorder %s40_s20, %s40_s20 }
   0xf   :  { %p927_p5 = scmp.lt.s32.totalorder %s925_s30, %s921_s29 }
  0x11   :  { %p928_p6 = por %p927_p5, %p926_p4 }
  0x13   :  { %p929_p7 = pnand %p928_p6, %p922_p3 }
  0x15   :  { %932 = shalt.err (!%p929_p7)
}
  0x16   :  { %42 = dma.hbm_to_vmem [thread:$0]  %s1284_s2, 16, %s40_s20, [#allocation6]  }
  0x17   :  { %s933_s16 = scalar_lea.hbm %s1282_s0, 128 }
  0x18   :  { %p934_p8 = scmp.ne.s32.totalorder %s1282_s0, %s933_s16  ;;  %p937_p9 = scmp.lt.u32.totalorder %s933_s16, %s1282_s0 }
  0x1a   :  { %p939_p10 = pnand %p937_p9, %p934_p8 }
  0x1c   :  { %942 = shalt.err (!%p939_p10)
}
  0x1d   :  { %s943_s23 = scalar_lea.vmem %s28_s22, 128  ;;  %p948_p12 = scmp.lt.s32.totalorder %s28_s22, %s28_s22 }
  0x1e   :  { %p944_p11 = scmp.ne.s32.totalorder %s28_s22, %s943_s23  ;;  %p949_p13 = scmp.lt.s32.totalorder %s943_s23, %s943_s23 }
  0x20   :  { %p950_p0 = por %p949_p13, %p948_p12 }
  0x22   :  { %p951_p1 = pnand %p950_p0, %p944_p11 }
  0x24   :  { %954 = shalt.err (!%p951_p1)
}
  0x25   :  { %30 = dma.hbm_to_vmem [thread:$0]  %s1282_s0, 128, %s28_s22, [#allocation4]  }
  0x26   :  { %s1007_s24 = smov [#allocation7]   ;;  %s955_s28 = scalar_lea.hbm %s1287_s5, 2048 }
  0x27   :  { %s52_s25 = sshll.u32 %s1007_s24, 4  ;;  %p956_p2 = scmp.ne.s32.totalorder %s1287_s5, %s955_s28  ;;  %s53_s25 = int_to_ptr.vmem [resolvable:$true] %s52_s25 }
  0x28   :  { %p959_p3 = scmp.lt.u32.totalorder %s955_s28, %s1287_s5 }
  0x2a   :  { %p961_p4 = pnand %p959_p3, %p956_p2 }
  0x2c   :  { %964 = shalt.err (!%p961_p4)
}
  0x2d   :  { %s965_s13 = scalar_lea.vmem %s53_s25, 2048  ;;  %p970_p6 = scmp.lt.s32.totalorder %s53_s25, %s53_s25 }
  0x2e   :  { %p966_p5 = scmp.ne.s32.totalorder %s53_s25, %s965_s13  ;;  %p971_p7 = scmp.lt.s32.totalorder %s965_s13, %s965_s13 }
  0x30   :  { %p972_p8 = por %p971_p7, %p970_p6 }
  0x32   :  { %p973_p9 = pnand %p972_p8, %p966_p5 }
  0x34   :  { %976 = shalt.err (!%p973_p9)
}
  0x35   :  { %s1008_s0 = smov 128   ;;  %s1009_s22 = smov 8  }
  0x36   :  { %58 = dma.hbm_to_vmem [thread:$0]  %s1287_s5, 2048, %s53_s25, [#allocation6], %s1008_s0, %s1008_s0, %s1009_s22  }
  0x37   :  { %s1010_s16 = smov [#allocation8]   ;;  %s977_s21 = scalar_lea.hbm %s1289_s7, 2048 }
  0x38   :  { %s66_s17 = sshll.u32 %s1010_s16, 4  ;;  %p978_p10 = scmp.ne.s32.totalorder %s1289_s7, %s977_s21  ;;  %s67_s17 = int_to_ptr.vmem [resolvable:$true] %s66_s17 }
  0x39   :  { %p981_p11 = scmp.lt.u32.totalorder %s977_s21, %s1289_s7 }
  0x3b   :  { %p983_p12 = pnand %p981_p11, %p978_p10 }
  0x3d   :  { %986 = shalt.err (!%p983_p12)
}
  0x3e   :  { %s987_s26 = scalar_lea.vmem %s67_s17, 2048  ;;  %p992_p0 = scmp.lt.s32.totalorder %s67_s17, %s67_s17 }
  0x3f   :  { %p988_p13 = scmp.ne.s32.totalorder %s67_s17, %s987_s26  ;;  %p993_p1 = scmp.lt.s32.totalorder %s987_s26, %s987_s26 }
  0x41   :  { %p994_p2 = por %p993_p1, %p992_p0 }
  0x43   :  { %p995_p3 = pnand %p994_p2, %p988_p13 }
  0x45   :  { %998 = shalt.err (!%p995_p3)
}
  0x46   :  { %72 = dma.hbm_to_vmem [thread:$0]  %s1289_s7, 2048, %s67_s17, [#allocation9], %s1008_s0, %s1008_s0, %s1009_s22  }
  0x47   :  { %999 = dma.done.wait [#allocation4], 128  }
  0x48   :  { %1000 = vsyncadd [#allocation4], 4294967168 }
  0x49   :  { %1001 = dma.done.wait [#allocation6], 2064  }
  0x4a   :  { %1002 = vsyncadd [#allocation6], 4294965232 }
  0x4b   :  { %1003 = dma.done.wait [#allocation9], 2048  }
  0x4c   :  { %1004 = vsyncadd [#allocation9], 4294965248  ;;  %v1011_v1 = vmov 0.0|0.0   ;;  %vm1012_vm0 = vmmov 0   ;;  %v1013_v2 = vmov 0.0   ;;  %v92_v3 = vld [vmem:[%s1283_s1] sm:$0xff] }
  0x4d   :  { %799 = vmatprep.subr.bf16.mxu0 %v1011_v1  ;;  %656 = vmatprep.mubr.msk.f32.mxu0 %vm1012_vm0, %v1013_v2  ;;  %v93_v4 = vld [vmem:[%s1283_s1 + $0x8] sm:$0xff]  ;;  %v178_v6 = vld [vmem:[%s1285_s3] sm:$0xff]  ;;  %v180_v8 = vld [vmem:[%s1285_s3 + $0x10] sm:$0xff]  ;;  %vm101_vm1 = vcmask 130048   ;;  %vm565_vm6 = vcmask 7168  }
  0x4e   :  { %802 = vmatprep.subr.bf16.mxu1 %v1011_v1  ;;  %691 = vmatprep.mubr.msk.f32.mxu1 %vm1012_vm0, %v1013_v2  ;;  %v800_v5 = vpack.c.bf16 %v93_v4, %v92_v3  ;;  %v179_v7 = vld [vmem:[%s1285_s3 + $0x8] sm:$0xff]  ;;  %v181_v10 = vld [vmem:[%s1285_s3 + $0x18] sm:$0xff]  ;;  %v182_v13 = vld [vmem:[%s1285_s3 + $0x20] sm:$0xff] }
  0x4f   :  { %v803_v9 = vpack.c.bf16 %v179_v7, %v178_v6  ;;  %v91_v11 = vld [vmem:[#allocation3] sm:$0xff]  ;;  %v806_v12 = vpack.c.bf16 %v181_v10, %v180_v8  ;;  %v184_v16 = vld [vmem:[%s1285_s3 + $0x30] sm:$0xff]  ;;  %v185_v17 = vld [vmem:[%s1285_s3 + $0x38] sm:$0xff] }
  0x50   :  { %801 = vmatpush3.bf16.msra.mxu0 %v800_v5  ;;  %v183_v14 = vld [vmem:[%s1285_s3 + $0x28] sm:$0xff]  ;;  %v812_v18 = vpack.c.bf16 %v185_v17, %v184_v16  ;;  %v186_v19 = vld [vmem:[%s1285_s3 + $0x40] sm:$0xff]  ;;  %v188_v22 = vld [vmem:[%s1285_s3 + $0x50] sm:$0xff] }
  0x51   :  { %804 = vmatpush3.bf16.msra.mxu1 %v803_v9  ;;  %826 = vmatprep.subr.bf16.mxu0 %v1011_v1  ;;  %v809_v15 = vpack.c.bf16 %v183_v14, %v182_v13  ;;  %v187_v20 = vld [vmem:[%s1285_s3 + $0x48] sm:$0xff]  ;;  %v189_v23 = vld [vmem:[%s1285_s3 + $0x58] sm:$0xff]  ;;  %v190_v25 = vld [vmem:[%s1285_s3 + $0x60] sm:$0xff] }
  0x52   :  { %805 = vmatprep.subr.bf16.mxu1 %v1011_v1  ;;  %v815_v21 = vpack.c.bf16 %v187_v20, %v186_v19  ;;  %v818_v24 = vpack.c.bf16 %v189_v23, %v188_v22  ;;  %v191_v26 = vld [vmem:[%s1285_s3 + $0x68] sm:$0xff]  ;;  %v192_v28 = vld [vmem:[%s1285_s3 + $0x70] sm:$0xff]  ;;  %v193_v29 = vld [vmem:[%s1285_s3 + $0x78] sm:$0xff] }
  0x53   :  { %657 = vmatmul.mubr.msk.f32.vlgmr.msra.gmra.mrb[0].mxu0 %vm101_vm1, %v91_v11  ;;  %v821_v27 = vpack.c.bf16 %v191_v26, %v190_v25  ;;  %v824_v30 = vpack.c.bf16 %v193_v29, %v192_v28  ;;  %v274_v31 = vld [vmem:[#allocation7] sm:$0xff]  ;;  %v275_v32 = vld [vmem:[#allocation7 + $0x8] sm:$0xff]  ;;  %v276_v33 = vld [vmem:[#allocation7 + $0x10] sm:$0xff] }
  0x54   :  { %726 = vmatprep.mubr.msk.f32.mxu0 %vm1012_vm0, %v1013_v2  ;;  %v827_v34 = vpack.c.bf16 %v275_v32, %v274_v31  ;;  %v277_v35 = vld [vmem:[#allocation7 + $0x18] sm:$0xff]  ;;  %v278_v37 = vld [vmem:[#allocation7 + $0x20] sm:$0xff]  ;;  %v279_v38 = vld [vmem:[#allocation7 + $0x28] sm:$0xff] }
  0x55   :  { %807 = vmatpush3.bf16.msra.mxu1 %v806_v12  ;;  %v830_v36 = vpack.c.bf16 %v277_v35, %v276_v33  ;;  %v833_v39 = vpack.c.bf16 %v279_v38, %v278_v37  ;;  %v280_v40 = vld [vmem:[#allocation7 + $0x30] sm:$0xff]  ;;  %v281_v41 = vld [vmem:[#allocation7 + $0x38] sm:$0xff]  ;;  %v282_v43 = vld [vmem:[#allocation7 + $0x40] sm:$0xff] }
  0x56   :  { %808 = vmatprep.subr.bf16.mxu1 %v1011_v1  ;;  %828 = vmatpush3.bf16.msra.mxu0 %v827_v34  ;;  %v836_v42 = vpack.c.bf16 %v281_v41, %v280_v40  ;;  %v283_v44 = vld [vmem:[#allocation7 + $0x48] sm:$0xff]  ;;  %v284_v46 = vld [vmem:[#allocation7 + $0x50] sm:$0xff]  ;;  %v285_v47 = vld [vmem:[#allocation7 + $0x58] sm:$0xff] }
  0x57   :  { %829 = vmatprep.subr.bf16.mxu0 %v1011_v1  ;;  %v839_v45 = vpack.c.bf16 %v283_v44, %v282_v43  ;;  %v842_v48 = vpack.c.bf16 %v285_v47, %v284_v46  ;;  %v286_v49 = vld [vmem:[#allocation7 + $0x60] sm:$0xff]  ;;  %v287_v50 = vld [vmem:[#allocation7 + $0x68] sm:$0xff]  ;;  %v574_v52 = vld [vmem:[#allocation5] ss:$0 sm:$0xff] }
  0x58   :  { %v845_v51 = vpack.c.bf16 %v287_v50, %v286_v49  ;;  %v288_v58 = vld [vmem:[#allocation7 + $0x70] sm:$0xff]  ;;  %v289_v59 = vld [vmem:[#allocation7 + $0x78] sm:$0xff]  ;;  %v370_v61 = vld [vmem:[#allocation8] sm:$0xff] }
  0x59   :  { %810 = vmatpush3.bf16.msra.mxu1 %v809_v15  ;;  %v848_v60 = vpack.c.bf16 %v289_v59, %v288_v58  ;;  %v371_v62 = vld [vmem:[#allocation8 + $0x8] sm:$0xff]  ;;  %v372_v63 = vld [vmem:[#allocation8 + $0x10] sm:$0xff]  ;;  %v373_v3 = vld [vmem:[#allocation8 + $0x18] sm:$0xff] }
  0x5a   :  { %811 = vmatprep.subr.bf16.mxu1 %v1011_v1  ;;  %831 = vmatpush3.bf16.msra.mxu0 %v830_v36  ;;  %v851_v0 = vpack.c.bf16 %v371_v62, %v370_v61  ;;  %v854_v4 = vpack.c.bf16 %v373_v3, %v372_v63  ;;  %v374_v5 = vld [vmem:[#allocation8 + $0x20] sm:$0xff]  ;;  %v375_v6 = vld [vmem:[#allocation8 + $0x28] sm:$0xff]  ;;  %v376_v8 = vld [vmem:[#allocation8 + $0x30] sm:$0xff] }
  0x5b   :  { %832 = vmatprep.subr.bf16.mxu0 %v1011_v1  ;;  %v857_v7 = vpack.c.bf16 %v375_v6, %v374_v5  ;;  %v377_v9 = vld [vmem:[#allocation8 + $0x38] sm:$0xff]  ;;  %v378_v11 = vld [vmem:[#allocation8 + $0x40] sm:$0xff]  ;;  %v379_v12 = vld [vmem:[#allocation8 + $0x48] sm:$0xff] }
  0x5c   :  { %v860_v10 = vpack.c.bf16 %v377_v9, %v376_v8  ;;  %v863_v13 = vpack.c.bf16 %v379_v12, %v378_v11  ;;  %v380_v14 = vld [vmem:[#allocation8 + $0x50] sm:$0xff]  ;;  %v381_v15 = vld [vmem:[#allocation8 + $0x58] sm:$0xff]  ;;  %v382_v17 = vld [vmem:[#allocation8 + $0x60] sm:$0xff] }
  0x5d   :  { %813 = vmatpush3.bf16.msra.mxu1 %v812_v18  ;;  %v866_v16 = vpack.c.bf16 %v381_v15, %v380_v14  ;;  %v383_v18 = vld [vmem:[#allocation8 + $0x68] sm:$0xff]  ;;  %v576_v20 = vld [vmem:[%s1286_s4] ss:$0 sm:$0xff]  ;;  %v471_v35 = vld [vmem:[%s1291_s9 + $0x28] sm:$0xff] }
  0x5e   :  { %814 = vmatprep.subr.bf16.mxu1 %v1011_v1  ;;  %834 = vmatpush3.bf16.msra.mxu0 %v833_v39  ;;  %v869_v19 = vpack.c.bf16 %v383_v18, %v382_v17  ;;  %v384_v26 = vld [vmem:[#allocation8 + $0x70] sm:$0xff]  ;;  %v468_v31 = vld [vmem:[%s1291_s9 + $0x10] sm:$0xff]  ;;  %v475_v41 = vld [vmem:[%s1291_s9 + $0x48] sm:$0xff] }
  0x5f   :  { %835 = vmatprep.subr.bf16.mxu0 %v1011_v1  ;;  %v466_v29 = vld [vmem:[%s1291_s9] sm:$0xff]  ;;  %v472_v37 = vld [vmem:[%s1291_s9 + $0x30] sm:$0xff]  ;;  %v473_v38 = vld [vmem:[%s1291_s9 + $0x38] sm:$0xff] }
  0x60   :  { %v470_v34 = vld [vmem:[%s1291_s9 + $0x20] sm:$0xff]  ;;  %v884_v39 = vpack.c.bf16 %v473_v38, %v472_v37  ;;  %v476_v43 = vld [vmem:[%s1291_s9 + $0x50] sm:$0xff]  ;;  %v477_v44 = vld [vmem:[%s1291_s9 + $0x58] sm:$0xff] }
  0x61   :  { %816 = vmatpush3.bf16.msra.mxu1 %v815_v21  ;;  %v881_v36 = vpack.c.bf16 %v471_v35, %v470_v34  ;;  %v474_v40 = vld [vmem:[%s1291_s9 + $0x40] sm:$0xff]  ;;  %v479_v47 = vld [vmem:[%s1291_s9 + $0x68] sm:$0xff] }
  0x62   :  { %817 = vmatprep.subr.bf16.mxu1 %v1011_v1  ;;  %837 = vmatpush3.bf16.msra.mxu0 %v836_v42  ;;  %v887_v42 = vpack.c.bf16 %v475_v41, %v474_v40  ;;  %v478_v46 = vld [vmem:[%s1291_s9 + $0x60] sm:$0xff] }
  0x63   :  { %838 = vmatprep.subr.bf16.mxu0 %v1011_v1  ;;  %v577_v49 = vld [vmem:[%s1288_s6] ss:$0 sm:$0xff] }
  0x64   :  { %v579_v63 = vld [vmem:[#allocation2] ss:$0 sm:$0xff] }
  0x65   :  { %819 = vmatpush3.bf16.msra.mxu1 %v818_v24 }
  0x66   :  { %820 = vmatprep.subr.bf16.mxu1 %v1011_v1  ;;  %840 = vmatpush3.bf16.msra.mxu0 %v839_v45  ;;  %v890_v45 = vpack.c.bf16 %v477_v44, %v476_v43 }
  0x67   :  { %841 = vmatprep.subr.bf16.mxu0 %v1011_v1 }
  0x69   :  { %822 = vmatpush3.bf16.msra.mxu1 %v821_v27  ;;  %v385_v27 = vld [vmem:[#allocation8 + $0x78] sm:$0xff] }
  0x6a   :  { %823 = vmatprep.subr.bf16.mxu1 %v1011_v1  ;;  %843 = vmatpush3.bf16.msra.mxu0 %v842_v48  ;;  %v872_v28 = vpack.c.bf16 %v385_v27, %v384_v26  ;;  %v893_v48 = vpack.c.bf16 %v479_v47, %v478_v46 }
  0x6b   :  { %844 = vmatprep.subr.bf16.mxu0 %v1011_v1 }
  0x6d   :  { %825 = vmatpush3.bf16.msra.mxu1 %v824_v30  ;;  %v467_v30 = vld [vmem:[%s1291_s9 + $0x8] sm:$0xff] }
  0x6e   :  { %850 = vmatprep.subr.bf16.mxu1 %v1011_v1  ;;  %846 = vmatpush3.bf16.msra.mxu0 %v845_v51  ;;  %v875_v32 = vpack.c.bf16 %v467_v30, %v466_v29 }
  0x6f   :  { %847 = vmatprep.subr.bf16.mxu0 %v1011_v1 }
  0x72   :  { %849 = vmatpush3.bf16.msra.mxu0 %v848_v60 }
  0x73   :  { %874 = vmatprep.subr.bf16.mxu0 %v1011_v1 }
 0x126   :  { %v171_v53 = vpop.f32.mrb[0].mxu0 }
 0x127   :  { %v172_v54 = vadd.f32 %v574_v52, %v171_v53  ;;  %v658_v55 = vpop.f32.mrb[1].mxu0 }
 0x128   :  { %v480_v55 = vld [vmem:[%s1291_s9 + $0x70] sm:$0xff] }
 0x129   :  { %v176_v56 = vmul.f32 1e-05, %v172_v54  ;;  %vm175_vm2 = vcmp.gt.f32.partialorder %v172_v54, 0.0 }
 0x12b   :  { %v177_v57 = vsel %vm175_vm2, %v172_v54, %v176_v56  ;;  %v481_v56 = vld [vmem:[%s1291_s9 + $0x78] sm:$0xff] }
 0x12c   :  { %692 = vmatmul.mubr.f32.vlgmr.msra.gmra.mrb[0].mxu1 %v177_v57  ;;  %v578_v57 = vld [vmem:[%s1290_s8] ss:$0 sm:$0xff] }
 0x12d   :  { %761 = vmatprep.mubr.msk.f32.mxu1 %vm1012_vm0, %v1013_v2  ;;  %852 = vmatpush3.bf16.msra.mxu1 %v851_v0 }
 0x12e   :  { %853 = vmatprep.subr.bf16.mxu1 %v1011_v1 }
 0x131   :  { %855 = vmatpush3.bf16.msra.mxu1 %v854_v4 }
 0x132   :  { %856 = vmatprep.subr.bf16.mxu1 %v1011_v1 }
 0x135   :  { %858 = vmatpush3.bf16.msra.mxu1 %v857_v7 }
 0x136   :  { %859 = vmatprep.subr.bf16.mxu1 %v1011_v1 }
 0x139   :  { %861 = vmatpush3.bf16.msra.mxu1 %v860_v10 }
 0x13a   :  { %862 = vmatprep.subr.bf16.mxu1 %v1011_v1 }
 0x13d   :  { %864 = vmatpush3.bf16.msra.mxu1 %v863_v13 }
 0x13e   :  { %865 = vmatprep.subr.bf16.mxu1 %v1011_v1 }
 0x141   :  { %867 = vmatpush3.bf16.msra.mxu1 %v866_v16 }
 0x142   :  { %868 = vmatprep.subr.bf16.mxu1 %v1011_v1 }
 0x145   :  { %870 = vmatpush3.bf16.msra.mxu1 %v869_v19 }
 0x146   :  { %871 = vmatprep.subr.bf16.mxu1 %v1011_v1 }
 0x149   :  { %873 = vmatpush3.bf16.msra.mxu1 %v872_v28 }
 0x1ff   :  { %v267_v21 = vpop.f32.mrb[0].mxu1 }
 0x200   :  { %v268_v22 = vadd.f32 %v576_v20, %v267_v21  ;;  %v693_v23 = vpop.f32.mrb[1].mxu1 }
 0x202   :  { %vm271_vm3 = vcmp.gt.f32.partialorder %v268_v22, 0.0  ;;  %v272_v24 = vmul.f32 1e-05, %v268_v22 }
 0x204   :  { %v273_v25 = vsel %vm271_vm3, %v268_v22, %v272_v24 }
 0x205   :  { %727 = vmatmul.mubr.f32.vlgmr.msra.gmra.mrb[2].mxu0 %v273_v25 }
 0x206   :  { %796 = vmatprep.mubr.msk.f32.mxu0 %vm1012_vm0, %v1013_v2  ;;  %v469_v2 = vld [vmem:[%s1291_s9 + $0x18] sm:$0xff]  ;;  %876 = vmatpush3.bf16.msra.mxu0 %v875_v32 }
 0x207   :  { %v878_v33 = vpack.c.bf16 %v469_v2, %v468_v31  ;;  %877 = vmatprep.subr.bf16.mxu0 %v1011_v1 }
 0x20a   :  { %879 = vmatpush3.bf16.msra.mxu0 %v878_v33 }
 0x20b   :  { %880 = vmatprep.subr.bf16.mxu0 %v1011_v1 }
 0x20e   :  { %882 = vmatpush3.bf16.msra.mxu0 %v881_v36 }
 0x20f   :  { %883 = vmatprep.subr.bf16.mxu0 %v1011_v1 }
 0x212   :  { %885 = vmatpush3.bf16.msra.mxu0 %v884_v39 }
 0x213   :  { %886 = vmatprep.subr.bf16.mxu0 %v1011_v1 }
 0x216   :  { %888 = vmatpush3.bf16.msra.mxu0 %v887_v42 }
 0x217   :  { %889 = vmatprep.subr.bf16.mxu0 %v1011_v1 }
 0x21a   :  { %891 = vmatpush3.bf16.msra.mxu0 %v890_v45 }
 0x21b   :  { %892 = vmatprep.subr.bf16.mxu0 %v1011_v1 }
 0x21e   :  { %894 = vmatpush3.bf16.msra.mxu0 %v893_v48 }
 0x21f   :  { %895 = vmatprep.subr.bf16.mxu0 %v1011_v1  ;;  %v896_v1 = vpack.c.bf16 %v481_v56, %v480_v55 }
 0x222   :  { %897 = vmatpush3.bf16.msra.mxu0 %v896_v1 }
 0x2d8   :  { %v363_v50 = vpop.f32.mrb[2].mxu0 }
 0x2d9   :  { %v364_v51 = vadd.f32 %v577_v49, %v363_v50  ;;  %v728_v52 = vpop.f32.mrb[3].mxu0 }
 0x2db   :  { %vm367_vm4 = vcmp.gt.f32.partialorder %v364_v51, 0.0  ;;  %v368_v53 = vmul.f32 1e-05, %v364_v51 }
 0x2dd   :  { %v369_v54 = vsel %vm367_vm4, %v364_v51, %v368_v53 }
 0x2de   :  { %762 = vmatmul.mubr.f32.vlgmr.msra.gmra.mrb[2].mxu1 %v369_v54 }
 0x3b1   :  { %v459_v58 = vpop.f32.mrb[2].mxu1 }
 0x3b2   :  { %v460_v59 = vadd.f32 %v578_v57, %v459_v58  ;;  %v763_v60 = vpop.f32.mrb[3].mxu1 }
 0x3b4   :  { %vm463_vm5 = vcmp.gt.f32.partialorder %v460_v59, 0.0  ;;  %v464_v61 = vmul.f32 1e-05, %v460_v59 }
 0x3b6   :  { %v465_v62 = vsel %vm463_vm5, %v460_v59, %v464_v61 }
 0x3b7   :  { %797 = vmatmul.mubr.f32.vlgmr.msra.gmra.mrb[4].mxu0 %v465_v62 }
 0x48a   :  { %v555_v0 = vpop.f32.mrb[4].mxu0 }
 0x48b   :  { %v556_v3 = vadd.f32 %v579_v63, %v555_v0  ;;  %v798_v4 = vpop.f32.mrb[5].mxu0 }
 0x48d   :  { %v580_v5 = vmul.f32 -1.442695, %v556_v3 }
 0x48f   :  { %907 = vpow2.f32 %v580_v5 }
 0x499   :  { %v908_v6 = vpop.eup %907 }
 0x49a   :  { %v562_v7 = vadd.f32 1.0, %v908_v6 }
 0x49c   :  { %909 = vrcp.f32 %v562_v7 }
 0x4a6   :  { %v910_v8 = vpop.eup %909 }
 0x4a7   :  { %566 = vst.msk [vmem:[%s1293_s11] sm:$0xff] %vm565_vm6, %v910_v8 }
 0x4a8   :  { %571 = vsyncpa [#allocation4], 1 }
 0x4a9   :  { %572 = vsyncpa [#allocation6], 1 }
 0x4aa   :  { %573 = vsyncpa [#allocation9], 1 }

</bundles_post_ra>
